<compile_context>
chip_gen: v7x
topology: tpu7x:2x2x1
jax: 0.10.0
libtpu: 0.0.40
codegen_flags: <defaults>
</compile_context>

<pallas_src>
import functools

import numpy as np
import jax
import jax.numpy as jnp
from jax import lax
from jax.experimental import pallas as pl
from jax.experimental.pallas import tpu as pltpu

EPS = 1e-5  # BatchNorm2d default eps


def _make_conv_bn_kernel(N, Cin, H, W, Cout, KH, KW):
    OH, OW = H - KH + 1, W - KW + 1
    NHW = N * H * W
    K = KH * KW * Cin
    inv_count = 1.0 / float(N * OH * OW)

    def kernel(x_ref, w_ref, gamma_ref, beta_ref, mask_ref, out_ref, col_ref):
        # x_ref:      (Cin, NHW)   flattened input, channels on sublanes
        # w_ref:      (Cout, K)    K = KH*KW*Cin, tap-major / channel-minor,
        #                          already scaled by 2 (folds y1 = x + x)
        # gamma/beta: (Cout, 1)
        # mask_ref:   (1, NHW)     1.0 at valid output columns, else 0.0
        # out_ref:    (Cout, NHW)  lane-dense result (junk at invalid columns)
        # col_ref:    (K, NHW)     VMEM im2col scratch
        x = x_ref[...]

        # --- im2col via XLU lane rolls (no HBM materialisation) -------------
        # Tap t = (i, j) occupies sublane rows [t*Cin, (t+1)*Cin) of col_ref.
        for t in range(KH * KW):
            i, j = divmod(t, KW)
            off = i * W + j  # static lane offset for this tap
            x_t = x if off == 0 else pltpu.roll(x, shift=(NHW - off) % NHW, axis=1)
            col_ref[t * Cin:(t + 1) * Cin, :] = x_t

        # --- one stacked (Cout,K) x (K,NHW) matmul ---------------------------
        # Weights already carry the x2 from `y1 = x + x` (bit-exact fold); the
        # conv bias is intentionally omitted -- it cancels exactly under the
        # BatchNorm mean subtraction below.
        y1 = jnp.dot(w_ref[...], col_ref[...],
                     preferred_element_type=jnp.float32,
                     precision=lax.Precision.HIGHEST)

        # --- BatchNorm2d, training-mode (biased) batch statistics -----------
        # Junk columns (receptive field outside the valid window) are masked
        # out of the statistics and sliced off in the wrapper.
        mask = mask_ref[...]
        mean = jnp.sum(y1 * mask, axis=1, keepdims=True) * inv_count     # (Cout,1)
        centered = y1 - mean
        cm = centered * mask
        var = jnp.sum(cm * cm, axis=1, keepdims=True) * inv_count        # (Cout,1)
        scale = lax.rsqrt(var + EPS) * gamma_ref[...]                    # (Cout,1)
        out_ref[...] = centered * scale + beta_ref[...]

    return kernel


@jax.jit
def conv_bn_forward(x, weight, bias, gamma, beta):
    """x: (N,Cin,H,W) f32; weight: (Cout,Cin,KH,KW). Returns (N,Cout,OH,OW)."""
    del bias  # cancels exactly under the BN mean subtraction (see kernel note)
    N, Cin, H, W = x.shape
    Cout, _, KH, KW = weight.shape
    OH, OW = H - KH + 1, W - KW + 1
    NHW = N * H * W
    K = KH * KW * Cin

    # (N,Cin,H,W) -> (Cin, N*H*W): small leading-axis transpose + free reshape.
    x_flat = x.transpose(1, 0, 2, 3).reshape(Cin, NHW).astype(jnp.float32)
    # (Cout,Cin,KH,KW) -> (Cout, KH*KW*Cin), tap-major / channel-minor to match
    # the im2col scratch row order; x2 from `y1 = x + x` folded in (bit-exact).
    w2 = (weight.astype(jnp.float32) * 2.0).transpose(0, 2, 3, 1).reshape(Cout, K)
    g2 = gamma.reshape(Cout, 1).astype(jnp.float32)
    b2 = beta.reshape(Cout, 1).astype(jnp.float32)

    # Compile-time valid-column mask (flat index falls inside the OHxOW window).
    m = np.arange(NHW)
    yy = (m % (H * W)) // W
    xx = m % W
    mask = jnp.asarray(((yy < OH) & (xx < OW)).astype(np.float32).reshape(1, NHW))

    kernel = _make_conv_bn_kernel(N, Cin, H, W, Cout, KH, KW)

    out_flat = pl.pallas_call(
        kernel,
        out_shape=jax.ShapeDtypeStruct((Cout, NHW), jnp.float32),
        grid=(1,),
        in_specs=[
            pl.BlockSpec((Cin, NHW), lambda i: (0, 0)),
            pl.BlockSpec((Cout, K), lambda i: (0, 0)),
            pl.BlockSpec((Cout, 1), lambda i: (0, 0)),
            pl.BlockSpec((Cout, 1), lambda i: (0, 0)),
            pl.BlockSpec((1, NHW), lambda i: (0, 0)),
        ],
        out_specs=pl.BlockSpec((Cout, NHW), lambda i: (0, 0)),
        scratch_shapes=[pltpu.VMEM((K, NHW), jnp.float32)],
        compiler_params=pltpu.CompilerParams(
            dimension_semantics=("arbitrary",)),
    )(x_flat, w2, g2, b2, mask)

    # (Cout, N*H*W) -> (Cout,N,H,W) -> keep valid window -> NCHW (consumer layout).
    out = out_flat.reshape(Cout, N, H, W)[:, :, :OH, :OW]
    return out.transpose(1, 0, 2, 3)


def _reference(x, weight, bias, gamma, beta):
    """Pure-JAX reference of the PyTorch module forward (training-mode BN)."""
    conv = lax.conv_general_dilated(
        x, weight, window_strides=(1, 1), padding="VALID",
        dimension_numbers=("NCHW", "OIHW", "NCHW"),
        precision=lax.Precision.HIGHEST)
    conv = conv + bias.reshape(1, -1, 1, 1)
    y1 = conv + conv
    mean = jnp.mean(y1, axis=(0, 2, 3), keepdims=True)
    var = jnp.mean((y1 - mean) ** 2, axis=(0, 2, 3), keepdims=True)
    return ((y1 - mean) * lax.rsqrt(var + EPS)
            * gamma.reshape(1, -1, 1, 1) + beta.reshape(1, -1, 1, 1))


if __name__ == "__main__":
    key = jax.random.PRNGKey(0)
    k_x, k_w, k_b = jax.random.split(key, 3)

    # Small shapes consistent with the module: Cin=3, kernel=3 -> need H,W >= 3.
    N, Cin, H, W = 2, 3, 8, 8
    Cout, KH, KW = 5, 3, 3

    x = jax.random.normal(k_x, (N, Cin, H, W), dtype=jnp.float32)

    # Deterministic parameter init (Conv2d-style uniform bound), BN default affine.
    fan_in = Cin * KH * KW
    bound = 1.0 / float(fan_in) ** 0.5
    weight = jax.random.uniform(k_w, (Cout, Cin, KH, KW), jnp.float32, -bound, bound)
    bias = jax.random.uniform(k_b, (Cout,), jnp.float32, -bound, bound)
    gamma = jnp.ones((Cout,), jnp.float32)   # BatchNorm2d default weight
    beta = jnp.zeros((Cout,), jnp.float32)   # BatchNorm2d default bias

    y = conv_bn_forward(x, weight, bias, gamma, beta)
    jax.block_until_ready(y)
    assert y.shape == (N, Cout, H - KH + 1, W - KW + 1), y.shape

    # Numerical check vs pure-JAX reference (tight: HIGHEST-precision matmul).
    y_ref = _reference(x, weight, bias, gamma, beta)
    max_err = float(jnp.max(jnp.abs(y - y_ref)))
    assert jnp.allclose(y, y_ref, atol=1e-4, rtol=1e-4), max_err

    print("KERNEL_OK")
</pallas_src>

<mosaic_0001>
module attributes {stable_mosaic.version = 11 : i64} {
  func.func @kernel(%arg0: i32, %arg1: memref<3x128xf32, #tpu.memory_space<vmem>>, %arg2: memref<5x27xf32, #tpu.memory_space<vmem>>, %arg3: memref<5x1xf32, #tpu.memory_space<vmem>>, %arg4: memref<5x1xf32, #tpu.memory_space<vmem>>, %arg5: memref<1x128xf32, #tpu.memory_space<vmem>>, %arg6: memref<5x128xf32, #tpu.memory_space<vmem>>, %arg7: memref<27x128xf32, #tpu.memory_space<vmem>>) attributes {dimension_semantics = [#tpu.dimension_semantics<arbitrary>], iteration_bounds = array<i64: 1>, scalar_prefetch = 0 : i64, scratch_operands = 1 : i64, tpu.core_type = #tpu.core_type<tc>, window_params = [{pipeline_mode = #tpu.pipeline_mode<synchronous>, transform_indices = @transform_0, window_bounds = array<i64: 3, 128>}, {pipeline_mode = #tpu.pipeline_mode<synchronous>, transform_indices = @transform_1, window_bounds = array<i64: 5, 27>}, {pipeline_mode = #tpu.pipeline_mode<synchronous>, transform_indices = @transform_2, window_bounds = array<i64: 5, 1>}, {pipeline_mode = #tpu.pipeline_mode<synchronous>, transform_indices = @transform_3, window_bounds = array<i64: 5, 1>}, {pipeline_mode = #tpu.pipeline_mode<synchronous>, transform_indices = @transform_4, window_bounds = array<i64: 1, 128>}, {pipeline_mode = #tpu.pipeline_mode<synchronous>, transform_indices = @transform_5, window_bounds = array<i64: 5, 128>}]} {
    %c0 = arith.constant 0 : index
    %c0_0 = arith.constant 0 : index
    %0 = vector.load %arg1[%c0, %c0_0] : memref<3x128xf32, #tpu.memory_space<vmem>>, vector<3x128xf32>
    %c0_1 = arith.constant 0 : index
    %c0_2 = arith.constant 0 : index
    %1 = vector.load %arg7[%c0_1, %c0_2] : memref<27x128xf32, #tpu.memory_space<vmem>>, vector<3x128xf32>
    tpu.vector_store %arg7[%c0_1, %c0_2], %0 {strides = array<i32>} : memref<27x128xf32, #tpu.memory_space<vmem>>, vector<3x128xf32>,
    %c127_i32 = arith.constant 127 : i32
    %2 = tpu.dynamic_rotate %0 by %c127_i32 dim 1 : vector<3x128xf32>, i32 -> vector<3x128xf32>
    %c3 = arith.constant 3 : index
    %c0_3 = arith.constant 0 : index
    %3 = vector.load %arg7[%c3, %c0_3] : memref<27x128xf32, #tpu.memory_space<vmem>>, vector<3x128xf32>
    tpu.vector_store %arg7[%c3, %c0_3], %2 {strides = array<i32>} : memref<27x128xf32, #tpu.memory_space<vmem>>, vector<3x128xf32>,
    %c126_i32 = arith.constant 126 : i32
    %4 = tpu.dynamic_rotate %0 by %c126_i32 dim 1 : vector<3x128xf32>, i32 -> vector<3x128xf32>
    %c6 = arith.constant 6 : index
    %c0_4 = arith.constant 0 : index
    %5 = vector.load %arg7[%c6, %c0_4] : memref<27x128xf32, #tpu.memory_space<vmem>>, vector<3x128xf32>
    tpu.vector_store %arg7[%c6, %c0_4], %4 {strides = array<i32>} : memref<27x128xf32, #tpu.memory_space<vmem>>, vector<3x128xf32>,
    %c120_i32 = arith.constant 120 : i32
    %6 = tpu.dynamic_rotate %0 by %c120_i32 dim 1 : vector<3x128xf32>, i32 -> vector<3x128xf32>
    %c9 = arith.constant 9 : index
    %c0_5 = arith.constant 0 : index
    %7 = vector.load %arg7[%c9, %c0_5] : memref<27x128xf32, #tpu.memory_space<vmem>>, vector<3x128xf32>
    tpu.vector_store %arg7[%c9, %c0_5], %6 {strides = array<i32>} : memref<27x128xf32, #tpu.memory_space<vmem>>, vector<3x128xf32>,
    %c119_i32 = arith.constant 119 : i32
    %8 = tpu.dynamic_rotate %0 by %c119_i32 dim 1 : vector<3x128xf32>, i32 -> vector<3x128xf32>
    %c12 = arith.constant 12 : index
    %c0_6 = arith.constant 0 : index
    %9 = vector.load %arg7[%c12, %c0_6] : memref<27x128xf32, #tpu.memory_space<vmem>>, vector<3x128xf32>
    tpu.vector_store %arg7[%c12, %c0_6], %8 {strides = array<i32>} : memref<27x128xf32, #tpu.memory_space<vmem>>, vector<3x128xf32>,
    %c118_i32 = arith.constant 118 : i32
    %10 = tpu.dynamic_rotate %0 by %c118_i32 dim 1 : vector<3x128xf32>, i32 -> vector<3x128xf32>
    %c15 = arith.constant 15 : index
    %c0_7 = arith.constant 0 : index
    %11 = vector.load %arg7[%c15, %c0_7] : memref<27x128xf32, #tpu.memory_space<vmem>>, vector<3x128xf32>
    tpu.vector_store %arg7[%c15, %c0_7], %10 {strides = array<i32>} : memref<27x128xf32, #tpu.memory_space<vmem>>, vector<3x128xf32>,
    %c112_i32 = arith.constant 112 : i32
    %12 = tpu.dynamic_rotate %0 by %c112_i32 dim 1 : vector<3x128xf32>, i32 -> vector<3x128xf32>
    %c18 = arith.constant 18 : index
    %c0_8 = arith.constant 0 : index
    %13 = vector.load %arg7[%c18, %c0_8] : memref<27x128xf32, #tpu.memory_space<vmem>>, vector<3x128xf32>
    tpu.vector_store %arg7[%c18, %c0_8], %12 {strides = array<i32>} : memref<27x128xf32, #tpu.memory_space<vmem>>, vector<3x128xf32>,
    %c111_i32 = arith.constant 111 : i32
    %14 = tpu.dynamic_rotate %0 by %c111_i32 dim 1 : vector<3x128xf32>, i32 -> vector<3x128xf32>
    %c21 = arith.constant 21 : index
    %c0_9 = arith.constant 0 : index
    %15 = vector.load %arg7[%c21, %c0_9] : memref<27x128xf32, #tpu.memory_space<vmem>>, vector<3x128xf32>
    tpu.vector_store %arg7[%c21, %c0_9], %14 {strides = array<i32>} : memref<27x128xf32, #tpu.memory_space<vmem>>, vector<3x128xf32>,
    %c110_i32 = arith.constant 110 : i32
    %16 = tpu.dynamic_rotate %0 by %c110_i32 dim 1 : vector<3x128xf32>, i32 -> vector<3x128xf32>
    %c24 = arith.constant 24 : index
    %c0_10 = arith.constant 0 : index
    %17 = vector.load %arg7[%c24, %c0_10] : memref<27x128xf32, #tpu.memory_space<vmem>>, vector<3x128xf32>
    tpu.vector_store %arg7[%c24, %c0_10], %16 {strides = array<i32>} : memref<27x128xf32, #tpu.memory_space<vmem>>, vector<3x128xf32>,
    %c0_11 = arith.constant 0 : index
    %c0_12 = arith.constant 0 : index
    %18 = vector.load %arg2[%c0_11, %c0_12] : memref<5x27xf32, #tpu.memory_space<vmem>>, vector<5x27xf32>
    %c0_13 = arith.constant 0 : index
    %c0_14 = arith.constant 0 : index
    %19 = vector.load %arg7[%c0_13, %c0_14] : memref<27x128xf32, #tpu.memory_space<vmem>>, vector<27x128xf32>
    %cst = arith.constant dense<0.000000e+00> : vector<5x128xf32>
    %20 = tpu.matmul %18, %19, %cst {dimension_numbers = #tpu.dot_dimension_numbers<[1], [0], [0], [1], [0, 0, 1, 1], [], []>, precision = #tpu.contract_precision<fp32>} : vector<5x27xf32>, vector<27x128xf32>, vector<5x128xf32> -> vector<5x128xf32>
    %c0_15 = arith.constant 0 : index
    %c0_16 = arith.constant 0 : index
    %21 = vector.load %arg5[%c0_15, %c0_16] : memref<1x128xf32, #tpu.memory_space<vmem>>, vector<1x128xf32>
    %22 = vector.broadcast %21 : vector<1x128xf32> to vector<5x128xf32>
    %23 = arith.mulf %20, %22 : vector<5x128xf32>
    %cst_17 = arith.constant dense<0.000000e+00> : vector<5xf32>
    %24 = vector.multi_reduction <add>, %23, %cst_17 [1] : vector<5x128xf32> to vector<5xf32>
    %25 = vector.shape_cast %24 : vector<5xf32> to vector<5x1xf32>
    %cst_18 = arith.constant 0.013888889 : f32
    %26 = vector.broadcast %cst_18 : f32 to vector<5x1xf32>
    %27 = arith.mulf %25, %26 : vector<5x1xf32>
    %28 = vector.broadcast %27 : vector<5x1xf32> to vector<5x128xf32>
    %29 = arith.subf %20, %28 : vector<5x128xf32>
    %30 = vector.broadcast %21 : vector<1x128xf32> to vector<5x128xf32>
    %31 = arith.mulf %29, %30 : vector<5x128xf32>
    %32 = arith.mulf %31, %31 : vector<5x128xf32>
    %cst_19 = arith.constant dense<0.000000e+00> : vector<5xf32>
    %33 = vector.multi_reduction <add>, %32, %cst_19 [1] : vector<5x128xf32> to vector<5xf32>
    %34 = vector.shape_cast %33 : vector<5xf32> to vector<5x1xf32>
    %cst_20 = arith.constant 0.013888889 : f32
    %35 = vector.broadcast %cst_20 : f32 to vector<5x1xf32>
    %36 = arith.mulf %34, %35 : vector<5x1xf32>
    %cst_21 = arith.constant 9.99999974E-6 : f32
    %37 = vector.broadcast %cst_21 : f32 to vector<5x1xf32>
    %38 = arith.addf %36, %37 : vector<5x1xf32>
    %39 = math.rsqrt %38 : vector<5x1xf32>
    %c0_22 = arith.constant 0 : index
    %c0_23 = arith.constant 0 : index
    %40 = vector.load %arg3[%c0_22, %c0_23] : memref<5x1xf32, #tpu.memory_space<vmem>>, vector<5x1xf32>
    %41 = arith.mulf %39, %40 : vector<5x1xf32>
    %42 = vector.broadcast %41 : vector<5x1xf32> to vector<5x128xf32>
    %43 = arith.mulf %29, %42 : vector<5x128xf32>
    %c0_24 = arith.constant 0 : index
    %c0_25 = arith.constant 0 : index
    %44 = vector.load %arg4[%c0_24, %c0_25] : memref<5x1xf32, #tpu.memory_space<vmem>>, vector<5x1xf32>
    %45 = vector.broadcast %44 : vector<5x1xf32> to vector<5x128xf32>
    %46 = arith.addf %43, %45 : vector<5x128xf32>
    %c0_26 = arith.constant 0 : index
    %c0_27 = arith.constant 0 : index
    %47 = vector.load %arg6[%c0_26, %c0_27] : memref<5x128xf32, #tpu.memory_space<vmem>>, vector<5x128xf32>
    tpu.vector_store %arg6[%c0_26, %c0_27], %46 {strides = array<i32>} : memref<5x128xf32, #tpu.memory_space<vmem>>, vector<5x128xf32>,
    return
  }
  func.func @transform_0(%arg0: i32) -> (i32, i32) {
    %c0_i32 = arith.constant 0 : i32
    %c0_i32_0 = arith.constant 0 : i32
    %c0_i32_1 = arith.constant 0 : i32
    return %c0_i32, %c0_i32_0 : i32, i32
  }
  func.func @transform_1(%arg0: i32) -> (i32, i32) {
    %c0_i32 = arith.constant 0 : i32
    %c0_i32_0 = arith.constant 0 : i32
    %c0_i32_1 = arith.constant 0 : i32
    return %c0_i32, %c0_i32_0 : i32, i32
  }
  func.func @transform_2(%arg0: i32) -> (i32, i32) {
    %c0_i32 = arith.constant 0 : i32
    %c0_i32_0 = arith.constant 0 : i32
    %c0_i32_1 = arith.constant 0 : i32
    return %c0_i32, %c0_i32_0 : i32, i32
  }
  func.func @transform_3(%arg0: i32) -> (i32, i32) {
    %c0_i32 = arith.constant 0 : i32
    %c0_i32_0 = arith.constant 0 : i32
    %c0_i32_1 = arith.constant 0 : i32
    return %c0_i32, %c0_i32_0 : i32, i32
  }
  func.func @transform_4(%arg0: i32) -> (i32, i32) {
    %c0_i32 = arith.constant 0 : i32
    %c0_i32_0 = arith.constant 0 : i32
    %c0_i32_1 = arith.constant 0 : i32
    return %c0_i32, %c0_i32_0 : i32, i32
  }
  func.func @transform_5(%arg0: i32) -> (i32, i32) {
    %c0_i32 = arith.constant 0 : i32
    %c0_i32_0 = arith.constant 0 : i32
    %c0_i32_1 = arith.constant 0 : i32
    return %c0_i32, %c0_i32_0 : i32, i32
  }
}

</mosaic_0001>

<bundles_post_ra>
// kernel: conv_bn_forward.1
= control target key start
LH: loop header
LB: loop body
LE: loop exit
PB: predicated region body
PF: predicated region fallthrough
CT: control target
= control target key end

     0   :  { %s744_s20 = smov 120   ;;  %s745_s21 = smov 127   ;;  %v746_v1 = vmov 0.0|0.0   ;;  %vm753_vm0 = vmmov 0   ;;  %v754_v2 = vmov 0.0   ;;  %vm51_vm1 = vcmask 220160   ;;  %s839_s0 = inlined_call_operand.vmem [shape: f32[3,128], index: 0, kind: input, shape index: {}]   ;;  %s840_s1 = inlined_call_operand.vmem [shape: f32[5,27], index: 1, kind: input, shape index: {}]   ;;  %s841_s4 = inlined_call_operand.vmem [shape: f32[1,128], index: 4, kind: input, shape index: {}]   ;;  %s842_s3 = inlined_call_operand.vmem [shape: f32[5,1], index: 3, kind: input, shape index: {}]   ;;  %s843_s2 = inlined_call_operand.vmem [shape: f32[5,1], index: 2, kind: input, shape index: {}]   ;;  %s844_s5 = inlined_call_operand.vmem [shape: f32[5,128], index: 5, kind: output, shape index: {}]  }
   0x1   :  { %v20_v0 = vld [vmem:[%s839_s0] sm:$0x7]  ;;  %683 = vmatprep.subr.bf16.mxu1 %v746_v1  ;;  %701 = vmatprep.subr.bf16.mxu0 %v746_v1  ;;  %s747_s22 = smov 119   ;;  %s748_s23 = smov 126   ;;  %vm55_vm2 = vcmask 1042432   ;;  %vm552_vm3 = vcmask 1044480  }
   0x2   :  { %28 = vrot.lane.b32.xlu1 %v20_v0, %s744_s20  ;;  %21 = vst [vmem:[#allocation2] sm:$0x7] %v20_v0  ;;  %22 = vrot.lane.b32.xlu0 %v20_v0, %s745_s21  ;;  %s749_s24 = smov 110   ;;  %s750_s25 = smov 118   ;;  %v46_v5 = vld [vmem:[%s840_s1] sm:$0x1f] }
   0x3   :  { %s751_s26 = smov 111   ;;  %s752_s0 = smov 112   ;;  %625 = vmatprep.mubr.msk.f32.mxu1 %vm753_vm0, %v754_v2  ;;  %658 = vmatprep.mubr.msk.f32.mxu0 %vm753_vm0, %v754_v2  ;;  %v53_v8 = vsel %vm51_vm1, %v46_v5, 0  ;;  %v586_v53 = vld [vmem:[%s841_s4] ss:$0 sm:$0xff] }
   0x4   :  { %v798_v11 = vand.u32 4294901760, %v53_v8 }
   0x6   :  { %31 = vrot.lane.b32.xlu1 %v20_v0, %s747_s22  ;;  %25 = vrot.lane.b32.xlu0 %v20_v0, %s748_s23  ;;  %v801_v15 = vsub.f32 %v53_v8, %v798_v11 }
   0x8   :  { %v130_v20 = vand.u32 4294901760, %v801_v15 }
   0xa   :  { %43 = vrot.lane.b32.xlu1 %v20_v0, %s749_s24  ;;  %34 = vrot.lane.b32.xlu0 %v20_v0, %s750_s25  ;;  %v131_v29 = vsub.f32 %v801_v15, %v130_v20 }
   0xc   :  { %v132_v37 = vand.u32 4294901760, %v131_v29 }
   0xe   :  { %40 = vrot.lane.b32.xlu1 %v20_v0, %s751_s26  ;;  %37 = vrot.lane.b32.xlu0 %v20_v0, %s752_s0 }
  0x74   :  { %v29_v3 = vpop.permute.xlu1 %28  ;;  %v23_v4 = vpop.permute.xlu0 %22 }
  0x75   :  { %30 = vst [vmem:[#allocation2 + $0x9] sm:$0x7] %v29_v3  ;;  %24 = vst [vmem:[#allocation2 + $0x3] sm:$0x7] %v23_v4 }
  0x78   :  { %v32_v6 = vpop.permute.xlu1 %31  ;;  %v26_v7 = vpop.permute.xlu0 %25 }
  0x79   :  { %33 = vst [vmem:[#allocation2 + $0xc] sm:$0x7] %v32_v6  ;;  %27 = vst [vmem:[#allocation2 + $0x6] sm:$0x7] %v26_v7  ;;  %v566_v6 = vld [vmem:[%s843_s2] sm:$0x1f] }
  0x7c   :  { %v44_v9 = vpop.permute.xlu1 %43  ;;  %v35_v10 = vpop.permute.xlu0 %34 }
  0x7d   :  { %45 = vst [vmem:[#allocation2 + $0x18] sm:$0x7] %v44_v9  ;;  %36 = vst [vmem:[#allocation2 + $0xf] sm:$0x7] %v35_v10 }
  0x80   :  { %v41_v12 = vpop.permute.xlu1 %40  ;;  %v38_v13 = vpop.permute.xlu0 %37  ;;  %v47_v14 = vld [vmem:[#allocation2] sm:$0xff] }
  0x81   :  { %42 = vst [vmem:[#allocation2 + $0x15] sm:$0x7] %v41_v12  ;;  %39 = vst [vmem:[#allocation2 + $0x12] sm:$0x7] %v38_v13  ;;  %v60_v16 = vand.u32 4294901760, %v47_v14 }
  0x83   :  { %v140_v17 = vsub.f32 %v47_v14, %v60_v16 }
  0x84   :  { %v48_v18 = vld [vmem:[#allocation2 + $0x8] sm:$0xff]  ;;  %v50_v19 = vld [vmem:[#allocation2 + $0x18] sm:$0x7] }
  0x85   :  { %v63_v21 = vand.u32 4294901760, %v48_v18  ;;  %v57_v22 = vsel %vm55_vm2, %v50_v19, 0  ;;  %v141_v23 = vand.u32 4294901760, %v140_v17 }
  0x86   :  { %v69_v24 = vand.u32 4294901760, %v57_v22 }
  0x87   :  { %v684_v25 = vpack.c.bf16 %v63_v21, %v60_v16  ;;  %v147_v26 = vsub.f32 %v48_v18, %v63_v21  ;;  %v142_v31 = vsub.f32 %v140_v17, %v141_v23 }
  0x88   :  { %v49_v27 = vld [vmem:[#allocation2 + $0x10] sm:$0xff]  ;;  %v161_v28 = vsub.f32 %v57_v22, %v69_v24 }
  0x89   :  { %685 = vmatpush3.bf16.msra.mxu1 %v684_v25  ;;  %703 = vmatpush3.bf16.msra.mxu0 %v684_v25  ;;  %v66_v30 = vand.u32 4294901760, %v49_v27  ;;  %v148_v32 = vand.u32 4294901760, %v147_v26  ;;  %v143_v38 = vand.u32 4294901760, %v142_v31  ;;  %v696_v49 = vpack.c.bf16 %v147_v26, %v140_v17 }
  0x8a   :  { %686 = vmatprep.subr.bf16.mxu1 %v746_v1  ;;  %704 = vmatprep.subr.bf16.mxu0 %v746_v1  ;;  %v162_v33 = vand.u32 4294901760, %v161_v28 }
  0x8b   :  { %v687_v34 = vpack.c.bf16 %v69_v24, %v66_v30  ;;  %v154_v35 = vsub.f32 %v49_v27, %v66_v30  ;;  %v149_v36 = vsub.f32 %v147_v26, %v148_v32  ;;  %v708_v43 = vpack.c.bf16 %v148_v32, %v141_v23 }
  0x8c   :  { %v163_v41 = vsub.f32 %v161_v28, %v162_v33 }
  0x8d   :  { %688 = vmatpush3.bf16.msra.mxu1 %v687_v34  ;;  %706 = vmatpush3.bf16.msra.mxu0 %v687_v34  ;;  %v150_v39 = vand.u32 4294901760, %v149_v36  ;;  %v155_v40 = vand.u32 4294901760, %v154_v35  ;;  %v699_v50 = vpack.c.bf16 %v161_v28, %v154_v35 }
  0x8e   :  { %689 = vmatprep.subr.bf16.mxu1 %v746_v1  ;;  %707 = vmatprep.subr.bf16.mxu0 %v746_v1  ;;  %v164_v46 = vand.u32 4294901760, %v163_v41 }
  0x8f   :  { %v690_v42 = vpack.c.bf16 %v150_v39, %v143_v38  ;;  %v156_v44 = vsub.f32 %v154_v35, %v155_v40  ;;  %v711_v48 = vpack.c.bf16 %v162_v33, %v155_v40 }
  0x90   :  { %626 = vmatmul.mubr.f32.vlgmr.msra.gmra.mrb[0].mxu1 %v132_v37  ;;  %659 = vmatmul.mubr.f32.vlgmr.msra.gmra.mrb[0].mxu0 %v130_v20 }
  0x91   :  { %691 = vmatpush3.bf16.msra.mxu1 %v690_v42  ;;  %709 = vmatpush3.bf16.msra.mxu0 %v708_v43  ;;  %v157_v45 = vand.u32 4294901760, %v156_v44 }
  0x92   :  { %692 = vmatprep.subr.bf16.mxu1 %v746_v1  ;;  %710 = vmatprep.subr.bf16.mxu0 %v746_v1 }
  0x93   :  { %v693_v47 = vpack.c.bf16 %v164_v46, %v157_v45  ;;  %636 = vmatprep.mubr.msk.f32.mxu1 %vm753_vm0, %v754_v2  ;;  %669 = vmatprep.mubr.msk.f32.mxu0 %vm753_vm0, %v754_v2 }
  0x95   :  { %694 = vmatpush3.bf16.msra.mxu1 %v693_v47  ;;  %712 = vmatpush3.bf16.msra.mxu0 %v711_v48 }
  0x96   :  { %695 = vmatprep.subr.bf16.mxu1 %v746_v1  ;;  %713 = vmatprep.subr.bf16.mxu0 %v746_v1 }
  0x98   :  { %637 = vmatmul.mubr.f32.vlgmr.msra.gmra.mrb[0].mxu1 %v798_v11  ;;  %670 = vmatmul.mubr.f32.vlgmr.msra.gmra.mrb[0].mxu0 %v798_v11 }
  0x99   :  { %697 = vmatpush3.bf16.msra.mxu1 %v696_v49  ;;  %715 = vmatpush3.bf16.msra.mxu0 %v684_v25 }
  0x9a   :  { %698 = vmatprep.subr.bf16.mxu1 %v746_v1  ;;  %716 = vmatprep.subr.bf16.mxu0 %v746_v1  ;;  %v755_v1 = vmov 0  }
  0x9b   :  { %647 = vmatprep.mubr.msk.f32.mxu1 %vm753_vm0, %v754_v2  ;;  %680 = vmatprep.mubr.msk.f32.mxu0 %vm753_vm0, %v754_v2  ;;  %v574_v2 = vld [vmem:[%s842_s3] sm:$0x1f] }
  0x9c   :  { %740 = vset.pattern.permute.xlu0 %v755_v1  ;;  %741 = vset.pattern.permute.xlu1 %v755_v1 }
  0x9d   :  { %700 = vmatpush3.bf16.msra.mxu1 %v699_v50  ;;  %718 = vmatpush3.bf16.msra.mxu0 %v687_v34 }
  0xa0   :  { %648 = vmatmul.mubr.f32.vlgmr.msra.gmra.mrb[0].mxu1 %v801_v15  ;;  %681 = vmatmul.mubr.f32.vlgmr.msra.gmra.mrb[0].mxu0 %v798_v11 }
 0x173   :  { %v305_v51 = vpop.f32.mrb[0].mxu1  ;;  %v540_v52 = vpop.f32.mrb[0].mxu0 }
 0x174   :  { %v719_v54 = vadd.f32 %v540_v52, %v305_v51  ;;  %v649_v55 = vpop.f32.mrb[1].mxu1  ;;  %v682_v56 = vpop.f32.mrb[1].mxu0 }
 0x176   :  { %v551_v57 = vmul.f32 %v719_v54, %v586_v53 }
 0x178   :  { %v553_v58 = vsel %vm552_vm3, %v551_v57, 0.0 }
 0x179   :  { %554 = vadd.xlane.f32.xlu0 %v553_v58 }
 0x206   :  { %v555_v59 = vpop.xlane.xlu0 %554 }
 0x207   :  { %v556_v60 = vmul.f32 0.013888889, %v555_v59 }
 0x209   :  { %v557_v61 = vsub.f32 %v719_v54, %v556_v60 }
 0x20b   :  { %v558_v62 = vmul.f32 %v586_v53, %v557_v61 }
 0x20d   :  { %v559_v63 = vmul.f32 %v558_v62, %v558_v62 }
 0x20f   :  { %v560_v0 = vsel %vm552_vm3, %v559_v63, 0.0 }
 0x210   :  { %561 = vadd.xlane.f32.xlu1 %v560_v0 }
 0x221   :  { %577 = vperm.xlu1 %741, %v574_v2  }
 0x29d   :  { %v562_v3 = vpop.xlane.xlu1 %561 }
 0x29e   :  { %v563_v4 = vmul.f32 0.013888889, %v562_v3 }
 0x2a0   :  { %v564_v5 = vadd.f32 1e-05, %v563_v4 }
 0x2a1   :  { %v578_v10 = vpop.permute.xlu1 %577 }
 0x2a2   :  { %742 = vrsqrt.f32 %v564_v5 }
 0x2ac   :  { %v743_v7 = vpop.eup %742 }
 0x2ad   :  { %v567_v8 = vmul.f32 %v743_v7, %v566_v6 }
 0x2af   :  { %570 = vperm.xlu0 %740, %v567_v8  }
 0x32e   :  { %v571_v9 = vpop.permute.xlu0 %570 }
 0x32f   :  { %v573_v11 = vmul.f32 %v571_v9, %v557_v61 }
 0x331   :  { %v580_v12 = vadd.f32 %v578_v10, %v573_v11 }
 0x333   :  { %581 = vst [vmem:[%s844_s5] sm:$0x1f] %v580_v12 }

</bundles_post_ra>
